<compile_context>
chip_gen: v6e
topology: v6e:2x2x1
jax: 0.10.0
libtpu: 0.0.40
codegen_flags: <defaults>
</compile_context>

<pallas_src>
import functools

import jax
import jax.numpy as jnp
from jax.experimental import pallas as pl
from jax.experimental.pallas import tpu as pltpu


# ---------------------------------------------------------------------------
# Hardware queries (trace-time, guarded so they can never break compilation).
# ---------------------------------------------------------------------------

def _vmem_limit_bytes():
    """Explicit scoped-VMEM limit: 3/4 of physical VMEM per TensorCore.

    v5e/v6e: 128 MiB physical -> 96 MiB limit; v7x: 64 MiB -> 48 MiB.
    Falls back to the most conservative generation (v7x) if the query fails.
    """
    phys = 64 * 1024 * 1024
    try:
        info = pltpu.get_tpu_info()
        v = int(getattr(info, "vmem_capacity_bytes", 0) or 0)
        if v > 0:
            phys = v
    except Exception:
        pass
    return min((phys * 3) // 4, 96 * 1024 * 1024)


def _num_tensorcores():
    """How many TensorCores share this chip (2 on v7x, 1 on v5e/v6e)."""
    try:
        info = pltpu.get_tpu_info()
    except Exception:
        return 1
    for name in ("num_cores", "core_count", "num_tensorcores",
                 "tensorcores_per_chip", "cores_per_chip"):
        v = getattr(info, name, None)
        if isinstance(v, int) and v >= 1:
            return max(1, min(int(v), 2))
    return 1


def _pick_blocks(B, C, itemsize, vmem_limit, block_rows=None, block_cols=None):
    """Pick (TB, TC) row/class tile sizes.

    Per-grid-step VMEM footprint ~= 2 inputs x 2 pipeline buffers x TB*TC*itemsize
    plus ~5 live f32 (TB, TC) temporaries in the fused KL body; keep that under
    3/4 of the explicit vmem limit, and keep each input block in the measured
    4-8 MiB HBM-roofline sweet spot.
    """
    sublane = max(8, 32 // max(itemsize, 1))     # f32: 8, bf16: 16, int8/fp8: 32

    per_elem = 4 * itemsize + 5 * 4
    usable = (vmem_limit * 3) // 4
    max_elems = usable // per_elem
    max_elems = min(max_elems, (8 * 1024 * 1024) // itemsize)   # <= 8 MiB / block
    max_elems = max(max_elems, sublane * 128)

    # Class (lane) tiling: only needed when even `sublane` rows of the full
    # class dim blow the budget (vocab-scale distillation).
    if block_cols is not None:
        tc = min(int(block_cols), C)
    elif C * sublane > max_elems:
        tc = ((max_elems // sublane) // 128) * 128
        tc = max(128, min(tc, 8192))
    else:
        tc = C
    if tc < C:
        assert tc % 128 == 0, "class tile must be lane-aligned (multiple of 128)"

    if block_rows is not None:
        tb = min(int(block_rows), B)
    else:
        tb = max_elems // max(tc, 1)
        tb = max(sublane, (tb // sublane) * sublane)
        if tb >= B:
            tb = B       # single full-extent row block (no divisibility needed)
    return tb, tc


# ---------------------------------------------------------------------------
# Kernel
# ---------------------------------------------------------------------------

def _kd_kernel(t_ref, s_ref, out_ref, m_t, l_t, m_s, l_s, a_ref, *,
               inv_temp, n_rows, n_cols, block_rows, block_cols,
               blocks_per_core, n_row_blocks, clamped, row_padded, col_padded):
    c = pl.program_id(0)            # megacore ("parallel") axis
    i = pl.program_id(1)            # row blocks (sequential)
    k = pl.program_id(2)            # class blocks (sequential, innermost)
    nkc = pl.num_programs(2)
    logical_block = c * blocks_per_core + i

    # Per-core scalar accumulator lives in the resident (1,1,1) output block.
    @pl.when((i == 0) & (k == 0))
    def _():
        out_ref[...] = jnp.zeros_like(out_ref)

    def step():
        # Re-init the per-row online-softmax state at the first class block of
        # every row block.
        @pl.when(k == 0)
        def _():
            m_t[...] = jnp.full_like(m_t, -jnp.inf)
            m_s[...] = jnp.full_like(m_s, -jnp.inf)
            l_t[...] = jnp.zeros_like(l_t)
            l_s[...] = jnp.zeros_like(l_s)
            a_ref[...] = jnp.zeros_like(a_ref)

        # Upcast in-kernel (inputs may be bf16); scale by 1/T with one VPU mul.
        t = t_ref[...].astype(jnp.float32) * inv_temp
        s = s_ref[...].astype(jnp.float32) * inv_temp

        if col_padded:
            col_ids = k * block_cols + jax.lax.broadcasted_iota(
                jnp.int32, (block_rows, block_cols), 1)
            col_ok = col_ids < n_cols
            t = jnp.where(col_ok, t, -jnp.inf)   # padded lanes: exp -> 0
            s = jnp.where(col_ok, s, -jnp.inf)

        # Online (flash-softmax style) rescaling of the per-row state.
        m_t_new = jnp.maximum(m_t[...], jnp.max(t, axis=1, keepdims=True))
        m_s_new = jnp.maximum(m_s[...], jnp.max(s, axis=1, keepdims=True))
        alpha_t = jnp.exp(m_t[...] - m_t_new)
        alpha_s = jnp.exp(m_s[...] - m_s_new)
        t_exp = jnp.exp(t - m_t_new)
        s_exp = jnp.exp(s - m_s_new)

        # Fused KL cross term: sum_j exp(t_j - m_t) * (t_j - s_j).
        # (The softmax normalizers collapse into per-row scalars at finalize.)
        if col_padded:
            # select (not multiply): 0 * (-inf - -inf) = NaN in padded lanes.
            cross = jnp.where(col_ok, t_exp * (t - s), 0.0)
        else:
            cross = t_exp * (t - s)

        l_t[...] = alpha_t * l_t[...] + jnp.sum(t_exp, axis=1, keepdims=True)
        l_s[...] = alpha_s * l_s[...] + jnp.sum(s_exp, axis=1, keepdims=True)
        a_ref[...] = alpha_t * a_ref[...] + jnp.sum(cross, axis=1, keepdims=True)
        m_t[...] = m_t_new
        m_s[...] = m_s_new

        # Finalize once all class blocks of this row block have streamed in:
        #   row_kl = A / l_t + (m_s - m_t) - log(l_t) + log(l_s)
        # Exact per-row division: runs once per row block on a (TB,1) vector,
        # i.e. off the per-element critical path, so it costs nothing.
        @pl.when(k == nkc - 1)
        def _():
            row_kl = (a_ref[...] / l_t[...]
                      + (m_s[...] - m_t[...])
                      - jnp.log(l_t[...]) + jnp.log(l_s[...]))
            if row_padded:
                row_ids = logical_block * block_rows + jax.lax.broadcasted_iota(
                    jnp.int32, (block_rows, 1), 0)
                # select (not multiply): garbage rows may hold NaN/Inf.
                row_kl = jnp.where(row_ids < n_rows, row_kl, 0.0)
            out_ref[...] = out_ref[...] + jnp.sum(row_kl)

    if clamped:
        # Fully-clamped duplicate row blocks (odd split across TensorCores)
        # skip all compute; only the already-in-flight DMA is wasted.
        pl.when(logical_block < n_row_blocks)(step)
    else:
        step()


# ---------------------------------------------------------------------------
# Wrapper
# ---------------------------------------------------------------------------

def kd_transfer_loss(out_t, out_s, *, temperature, reduction,
                     block_rows=None, block_cols=None):
    """Pallas equivalent of KDTransferLoss(temperature, reduction)(out_t, out_s)."""
    assert out_t.shape == out_s.shape and out_t.ndim == 2
    assert out_t.dtype == out_s.dtype
    B, C = out_t.shape
    itemsize = jnp.dtype(out_t.dtype).itemsize

    vmem_limit = _vmem_limit_bytes()
    TB, TC = _pick_blocks(B, C, itemsize, vmem_limit, block_rows, block_cols)

    nb = pl.cdiv(B, TB)                      # row blocks
    nkc = pl.cdiv(C, TC)                     # class blocks
    ncores = _num_tensorcores() if nb > 1 else 1
    ncores = max(1, min(ncores, nb))
    nbpc = pl.cdiv(nb, ncores)               # row blocks per core
    clamped = ncores * nbpc > nb             # odd split -> one duplicate block
    row_padded = (B % TB) != 0
    col_padded = (C % TC) != 0

    if clamped:
        def row_block(c, i):
            return jnp.minimum(c * nbpc + i, nb - 1)
    else:
        def row_block(c, i):
            return c * nbpc + i

    def in_map(c, i, k):
        return (row_block(c, i), k)

    kernel = functools.partial(
        _kd_kernel,
        inv_temp=1.0 / float(temperature),
        n_rows=B, n_cols=C,
        block_rows=TB, block_cols=TC,
        blocks_per_core=nbpc, n_row_blocks=nb,
        clamped=clamped, row_padded=row_padded, col_padded=col_padded)

    # Memory-bound streaming reduction: tell XLA so it can overlap neighbors.
    cost = pl.CostEstimate(
        flops=12 * B * C,
        transcendentals=2 * B * C,
        bytes_accessed=2 * B * C * itemsize + 4 * ncores)

    partials = pl.pallas_call(
        kernel,
        out_shape=jax.ShapeDtypeStruct((ncores, 1, 1), jnp.float32),
        grid_spec=pltpu.PrefetchScalarGridSpec(
            num_scalar_prefetch=0,
            grid=(ncores, nbpc, nkc),
            in_specs=[
                pl.BlockSpec((TB, TC), in_map),
                pl.BlockSpec((TB, TC), in_map),
            ],
            out_specs=pl.BlockSpec((1, 1, 1), lambda c, i, k: (c, 0, 0)),
            scratch_shapes=[pltpu.VMEM((TB, 1), jnp.float32)] * 5,  # m_t,l_t,m_s,l_s,A
        ),
        compiler_params=pltpu.CompilerParams(
            dimension_semantics=("parallel", "arbitrary", "arbitrary"),
            vmem_limit_bytes=vmem_limit,
        ),
        cost_estimate=cost,
    )(out_t, out_s)

    total = jnp.sum(partials[:, 0, 0])

    if reduction == "sum":
        return total
    if reduction == "batchmean":
        return total / B
    if reduction == "mean":
        return total / (B * C)
    # TODO(synk): reduction='none' (elementwise output) not implemented here.
    raise ValueError(f"unsupported reduction: {reduction}")


# ---------------------------------------------------------------------------
# Pure-JAX reference and self-test
# ---------------------------------------------------------------------------

def _reference(out_t, out_s, temperature, reduction):
    # Mirrors PyTorch F.kl_div(log_softmax(s/T), softmax(t/T)).
    out_t = out_t.astype(jnp.float32)
    out_s = out_s.astype(jnp.float32)
    log_p_s = jax.nn.log_softmax(out_s / temperature, axis=1)
    p_t = jax.nn.softmax(out_t / temperature, axis=1)
    pointwise = jnp.where(p_t > 0, p_t * (jnp.log(p_t) - log_p_s), 0.0)
    total = jnp.sum(pointwise)
    if reduction == "sum":
        return total
    if reduction == "batchmean":
        return total / out_t.shape[0]
    if reduction == "mean":
        return total / out_t.size
    raise ValueError(reduction)


def _check(loss, ref, tag):
    loss = jax.block_until_ready(loss)
    assert jnp.allclose(loss, ref, rtol=1e-4, atol=1e-4), (tag, loss, ref)


if __name__ == "__main__":
    temperature = 4.0
    keys = jax.random.split(jax.random.PRNGKey(0), 10)

    # Case 1: small logits, single full block (batch=8, classes=32).
    t1 = jax.random.normal(keys[0], (8, 32), dtype=jnp.float32)
    s1 = jax.random.normal(keys[1], (8, 32), dtype=jnp.float32)
    _check(kd_transfer_loss(t1, s1, temperature=temperature, reduction="batchmean"),
           _reference(t1, s1, temperature, "batchmean"), "case1")

    # Case 2: row tiling + partial last row block (+ 2-core split on v7x).
    t2 = jax.random.normal(keys[2], (20, 32), dtype=jnp.float32)
    s2 = jax.random.normal(keys[3], (20, 32), dtype=jnp.float32)
    _check(kd_transfer_loss(t2, s2, temperature=temperature, reduction="sum",
                            block_rows=8),
           _reference(t2, s2, temperature, "sum"), "case2")

    # Case 3: class tiling (3 class blocks) with online logsumexp + partial rows.
    t3 = jax.random.normal(keys[4], (12, 384), dtype=jnp.float32)
    s3 = jax.random.normal(keys[5], (12, 384), dtype=jnp.float32)
    _check(kd_transfer_loss(t3, s3, temperature=temperature, reduction="mean",
                            block_rows=8, block_cols=128),
           _reference(t3, s3, temperature, "mean"), "case3")

    # Case 4: class tiling with a padded (masked) last class block (C=200).
    t4 = jax.random.normal(keys[6], (16, 200), dtype=jnp.float32)
    s4 = jax.random.normal(keys[7], (16, 200), dtype=jnp.float32)
    _check(kd_transfer_loss(t4, s4, temperature=temperature, reduction="sum",
                            block_cols=128),
           _reference(t4, s4, temperature, "sum"), "case4")

    # Case 5: bf16 inputs (native-dtype DMA, in-kernel upcast), row + class tiles.
    t5 = jax.random.normal(keys[8], (24, 256), dtype=jnp.float32).astype(jnp.bfloat16)
    s5 = jax.random.normal(keys[9], (24, 256), dtype=jnp.float32).astype(jnp.bfloat16)
    _check(kd_transfer_loss(t5, s5, temperature=temperature, reduction="batchmean",
                            block_rows=16, block_cols=128),
           _reference(t5, s5, temperature, "batchmean"), "case5")

    print("KERNEL_OK")
</pallas_src>

<mosaic_0001>
module attributes {stable_mosaic.version = 11 : i64} {
  func.func @_kd_kernel(%arg0: i32, %arg1: i32, %arg2: i32, %arg3: memref<8x32xf32, #tpu.memory_space<vmem>>, %arg4: memref<8x32xf32, #tpu.memory_space<vmem>>, %arg5: memref<1x1x1xf32, #tpu.memory_space<vmem>>, %arg6: memref<8x1xf32, #tpu.memory_space<vmem>>, %arg7: memref<8x1xf32, #tpu.memory_space<vmem>>, %arg8: memref<8x1xf32, #tpu.memory_space<vmem>>, %arg9: memref<8x1xf32, #tpu.memory_space<vmem>>, %arg10: memref<8x1xf32, #tpu.memory_space<vmem>>) attributes {dimension_semantics = [#tpu.dimension_semantics<parallel>, #tpu.dimension_semantics<arbitrary>, #tpu.dimension_semantics<arbitrary>], iteration_bounds = array<i64: 1, 1, 1>, scalar_prefetch = 0 : i64, scratch_operands = 5 : i64, tpu.core_type = #tpu.core_type<tc>, window_params = [{transform_indices = @transform_0, window_bounds = array<i64: 8, 32>}, {transform_indices = @transform_1, window_bounds = array<i64: 8, 32>}, {transform_indices = @transform_2, window_bounds = array<i64: 1, 1, 1>}]} {
    %c0_i32 = arith.constant 0 : i32
    %0 = arith.cmpi eq, %arg1, %c0_i32 : i32
    %c0_i32_0 = arith.constant 0 : i32
    %1 = arith.cmpi eq, %arg2, %c0_i32_0 : i32
    %2 = arith.andi %0, %1 : i1
    %3 = arith.extui %2 : i1 to i32
    %c0_i32_1 = arith.constant 0 : i32
    %4 = arith.cmpi ne, %3, %c0_i32_1 : i32
    scf.if %4 {
      %cst_39 = arith.constant 0.000000e+00 : f32
      %59 = vector.broadcast %cst_39 : f32 to vector<1x1x1xf32>
      %c0_40 = arith.constant 0 : index
      %c0_41 = arith.constant 0 : index
      %c0_42 = arith.constant 0 : index
      %60 = vector.load %arg5[%c0_40, %c0_41, %c0_42] : memref<1x1x1xf32, #tpu.memory_space<vmem>>, vector<1x1x1xf32>
      tpu.vector_store %arg5[%c0_40, %c0_41, %c0_42], %59 {strides = array<i32>} : memref<1x1x1xf32, #tpu.memory_space<vmem>>, vector<1x1x1xf32>,
    } else {
    }
    %c0_i32_2 = arith.constant 0 : i32
    %5 = arith.cmpi eq, %arg2, %c0_i32_2 : i32
    %6 = arith.extui %5 : i1 to i32
    %c0_i32_3 = arith.constant 0 : i32
    %7 = arith.cmpi ne, %6, %c0_i32_3 : i32
    scf.if %7 {
      %cst_39 = arith.constant 0xFF800000 : f32
      %59 = vector.broadcast %cst_39 : f32 to vector<8x1xf32>
      %c0_40 = arith.constant 0 : index
      %c0_41 = arith.constant 0 : index
      %60 = vector.load %arg6[%c0_40, %c0_41] : memref<8x1xf32, #tpu.memory_space<vmem>>, vector<8x1xf32>
      tpu.vector_store %arg6[%c0_40, %c0_41], %59 {strides = array<i32>} : memref<8x1xf32, #tpu.memory_space<vmem>>, vector<8x1xf32>,
      %cst_42 = arith.constant 0xFF800000 : f32
      %61 = vector.broadcast %cst_42 : f32 to vector<8x1xf32>
      %c0_43 = arith.constant 0 : index
      %c0_44 = arith.constant 0 : index
      %62 = vector.load %arg8[%c0_43, %c0_44] : memref<8x1xf32, #tpu.memory_space<vmem>>, vector<8x1xf32>
      tpu.vector_store %arg8[%c0_43, %c0_44], %61 {strides = array<i32>} : memref<8x1xf32, #tpu.memory_space<vmem>>, vector<8x1xf32>,
      %cst_45 = arith.constant 0.000000e+00 : f32
      %63 = vector.broadcast %cst_45 : f32 to vector<8x1xf32>
      %c0_46 = arith.constant 0 : index
      %c0_47 = arith.constant 0 : index
      %64 = vector.load %arg7[%c0_46, %c0_47] : memref<8x1xf32, #tpu.memory_space<vmem>>, vector<8x1xf32>
      tpu.vector_store %arg7[%c0_46, %c0_47], %63 {strides = array<i32>} : memref<8x1xf32, #tpu.memory_space<vmem>>, vector<8x1xf32>,
      %cst_48 = arith.constant 0.000000e+00 : f32
      %65 = vector.broadcast %cst_48 : f32 to vector<8x1xf32>
      %c0_49 = arith.constant 0 : index
      %c0_50 = arith.constant 0 : index
      %66 = vector.load %arg9[%c0_49, %c0_50] : memref<8x1xf32, #tpu.memory_space<vmem>>, vector<8x1xf32>
      tpu.vector_store %arg9[%c0_49, %c0_50], %65 {strides = array<i32>} : memref<8x1xf32, #tpu.memory_space<vmem>>, vector<8x1xf32>,
      %cst_51 = arith.constant 0.000000e+00 : f32
      %67 = vector.broadcast %cst_51 : f32 to vector<8x1xf32>
      %c0_52 = arith.constant 0 : index
      %c0_53 = arith.constant 0 : index
      %68 = vector.load %arg10[%c0_52, %c0_53] : memref<8x1xf32, #tpu.memory_space<vmem>>, vector<8x1xf32>
      tpu.vector_store %arg10[%c0_52, %c0_53], %67 {strides = array<i32>} : memref<8x1xf32, #tpu.memory_space<vmem>>, vector<8x1xf32>,
    } else {
    }
    %c0 = arith.constant 0 : index
    %c0_4 = arith.constant 0 : index
    %8 = vector.load %arg3[%c0, %c0_4] : memref<8x32xf32, #tpu.memory_space<vmem>>, vector<8x32xf32>
    %cst = arith.constant 2.500000e-01 : f32
    %9 = vector.broadcast %cst : f32 to vector<8x32xf32>
    %10 = arith.mulf %8, %9 : vector<8x32xf32>
    %c0_5 = arith.constant 0 : index
    %c0_6 = arith.constant 0 : index
    %11 = vector.load %arg4[%c0_5, %c0_6] : memref<8x32xf32, #tpu.memory_space<vmem>>, vector<8x32xf32>
    %cst_7 = arith.constant 2.500000e-01 : f32
    %12 = vector.broadcast %cst_7 : f32 to vector<8x32xf32>
    %13 = arith.mulf %11, %12 : vector<8x32xf32>
    %c0_8 = arith.constant 0 : index
    %c0_9 = arith.constant 0 : index
    %14 = vector.load %arg6[%c0_8, %c0_9] : memref<8x1xf32, #tpu.memory_space<vmem>>, vector<8x1xf32>
    %cst_10 = arith.constant dense<0xFF800000> : vector<8xf32>
    %15 = vector.multi_reduction <maximumf>, %10, %cst_10 [1] : vector<8x32xf32> to vector<8xf32>
    %16 = vector.shape_cast %15 : vector<8xf32> to vector<8x1xf32>
    %17 = arith.maximumf %14, %16 : vector<8x1xf32>
    %c0_11 = arith.constant 0 : index
    %c0_12 = arith.constant 0 : index
    %18 = vector.load %arg8[%c0_11, %c0_12] : memref<8x1xf32, #tpu.memory_space<vmem>>, vector<8x1xf32>
    %cst_13 = arith.constant dense<0xFF800000> : vector<8xf32>
    %19 = vector.multi_reduction <maximumf>, %13, %cst_13 [1] : vector<8x32xf32> to vector<8xf32>
    %20 = vector.shape_cast %19 : vector<8xf32> to vector<8x1xf32>
    %21 = arith.maximumf %18, %20 : vector<8x1xf32>
    %c0_14 = arith.constant 0 : index
    %c0_15 = arith.constant 0 : index
    %22 = vector.load %arg6[%c0_14, %c0_15] : memref<8x1xf32, #tpu.memory_space<vmem>>, vector<8x1xf32>
    %23 = arith.subf %22, %17 : vector<8x1xf32>
    %24 = math.exp %23 : vector<8x1xf32>
    %c0_16 = arith.constant 0 : index
    %c0_17 = arith.constant 0 : index
    %25 = vector.load %arg8[%c0_16, %c0_17] : memref<8x1xf32, #tpu.memory_space<vmem>>, vector<8x1xf32>
    %26 = arith.subf %25, %21 : vector<8x1xf32>
    %27 = math.exp %26 : vector<8x1xf32>
    %28 = vector.broadcast %17 : vector<8x1xf32> to vector<8x32xf32>
    %29 = arith.subf %10, %28 : vector<8x32xf32>
    %30 = math.exp %29 : vector<8x32xf32>
    %31 = vector.broadcast %21 : vector<8x1xf32> to vector<8x32xf32>
    %32 = arith.subf %13, %31 : vector<8x32xf32>
    %33 = math.exp %32 : vector<8x32xf32>
    %34 = arith.subf %10, %13 : vector<8x32xf32>
    %35 = arith.mulf %30, %34 : vector<8x32xf32>
    %c0_18 = arith.constant 0 : index
    %c0_19 = arith.constant 0 : index
    %36 = vector.load %arg7[%c0_18, %c0_19] : memref<8x1xf32, #tpu.memory_space<vmem>>, vector<8x1xf32>
    %37 = arith.mulf %24, %36 : vector<8x1xf32>
    %cst_20 = arith.constant dense<0.000000e+00> : vector<8xf32>
    %38 = vector.multi_reduction <add>, %30, %cst_20 [1] : vector<8x32xf32> to vector<8xf32>
    %39 = vector.shape_cast %38 : vector<8xf32> to vector<8x1xf32>
    %40 = arith.addf %37, %39 : vector<8x1xf32>
    %c0_21 = arith.constant 0 : index
    %c0_22 = arith.constant 0 : index
    %41 = vector.load %arg7[%c0_21, %c0_22] : memref<8x1xf32, #tpu.memory_space<vmem>>, vector<8x1xf32>
    tpu.vector_store %arg7[%c0_21, %c0_22], %40 {strides = array<i32>} : memref<8x1xf32, #tpu.memory_space<vmem>>, vector<8x1xf32>,
    %c0_23 = arith.constant 0 : index
    %c0_24 = arith.constant 0 : index
    %42 = vector.load %arg9[%c0_23, %c0_24] : memref<8x1xf32, #tpu.memory_space<vmem>>, vector<8x1xf32>
    %43 = arith.mulf %27, %42 : vector<8x1xf32>
    %cst_25 = arith.constant dense<0.000000e+00> : vector<8xf32>
    %44 = vector.multi_reduction <add>, %33, %cst_25 [1] : vector<8x32xf32> to vector<8xf32>
    %45 = vector.shape_cast %44 : vector<8xf32> to vector<8x1xf32>
    %46 = arith.addf %43, %45 : vector<8x1xf32>
    %c0_26 = arith.constant 0 : index
    %c0_27 = arith.constant 0 : index
    %47 = vector.load %arg9[%c0_26, %c0_27] : memref<8x1xf32, #tpu.memory_space<vmem>>, vector<8x1xf32>
    tpu.vector_store %arg9[%c0_26, %c0_27], %46 {strides = array<i32>} : memref<8x1xf32, #tpu.memory_space<vmem>>, vector<8x1xf32>,
    %c0_28 = arith.constant 0 : index
    %c0_29 = arith.constant 0 : index
    %48 = vector.load %arg10[%c0_28, %c0_29] : memref<8x1xf32, #tpu.memory_space<vmem>>, vector<8x1xf32>
    %49 = arith.mulf %24, %48 : vector<8x1xf32>
    %cst_30 = arith.constant dense<0.000000e+00> : vector<8xf32>
    %50 = vector.multi_reduction <add>, %35, %cst_30 [1] : vector<8x32xf32> to vector<8xf32>
    %51 = vector.shape_cast %50 : vector<8xf32> to vector<8x1xf32>
    %52 = arith.addf %49, %51 : vector<8x1xf32>
    %c0_31 = arith.constant 0 : index
    %c0_32 = arith.constant 0 : index
    %53 = vector.load %arg10[%c0_31, %c0_32] : memref<8x1xf32, #tpu.memory_space<vmem>>, vector<8x1xf32>
    tpu.vector_store %arg10[%c0_31, %c0_32], %52 {strides = array<i32>} : memref<8x1xf32, #tpu.memory_space<vmem>>, vector<8x1xf32>,
    %c0_33 = arith.constant 0 : index
    %c0_34 = arith.constant 0 : index
    %54 = vector.load %arg6[%c0_33, %c0_34] : memref<8x1xf32, #tpu.memory_space<vmem>>, vector<8x1xf32>
    tpu.vector_store %arg6[%c0_33, %c0_34], %17 {strides = array<i32>} : memref<8x1xf32, #tpu.memory_space<vmem>>, vector<8x1xf32>,
    %c0_35 = arith.constant 0 : index
    %c0_36 = arith.constant 0 : index
    %55 = vector.load %arg8[%c0_35, %c0_36] : memref<8x1xf32, #tpu.memory_space<vmem>>, vector<8x1xf32>
    tpu.vector_store %arg8[%c0_35, %c0_36], %21 {strides = array<i32>} : memref<8x1xf32, #tpu.memory_space<vmem>>, vector<8x1xf32>,
    %c0_i32_37 = arith.constant 0 : i32
    %56 = arith.cmpi eq, %arg2, %c0_i32_37 : i32
    %57 = arith.extui %56 : i1 to i32
    %c0_i32_38 = arith.constant 0 : i32
    %58 = arith.cmpi ne, %57, %c0_i32_38 : i32
    scf.if %58 {
      %c0_39 = arith.constant 0 : index
      %c0_40 = arith.constant 0 : index
      %59 = vector.load %arg10[%c0_39, %c0_40] : memref<8x1xf32, #tpu.memory_space<vmem>>, vector<8x1xf32>
      %c0_41 = arith.constant 0 : index
      %c0_42 = arith.constant 0 : index
      %60 = vector.load %arg7[%c0_41, %c0_42] : memref<8x1xf32, #tpu.memory_space<vmem>>, vector<8x1xf32>
      %61 = arith.divf %59, %60 : vector<8x1xf32>
      %c0_43 = arith.constant 0 : index
      %c0_44 = arith.constant 0 : index
      %62 = vector.load %arg8[%c0_43, %c0_44] : memref<8x1xf32, #tpu.memory_space<vmem>>, vector<8x1xf32>
      %c0_45 = arith.constant 0 : index
      %c0_46 = arith.constant 0 : index
      %63 = vector.load %arg6[%c0_45, %c0_46] : memref<8x1xf32, #tpu.memory_space<vmem>>, vector<8x1xf32>
      %64 = arith.subf %62, %63 : vector<8x1xf32>
      %65 = arith.addf %61, %64 : vector<8x1xf32>
      %c0_47 = arith.constant 0 : index
      %c0_48 = arith.constant 0 : index
      %66 = vector.load %arg7[%c0_47, %c0_48] : memref<8x1xf32, #tpu.memory_space<vmem>>, vector<8x1xf32>
      %67 = math.log %66 : vector<8x1xf32>
      %68 = arith.subf %65, %67 : vector<8x1xf32>
      %c0_49 = arith.constant 0 : index
      %c0_50 = arith.constant 0 : index
      %69 = vector.load %arg9[%c0_49, %c0_50] : memref<8x1xf32, #tpu.memory_space<vmem>>, vector<8x1xf32>
      %70 = math.log %69 : vector<8x1xf32>
      %71 = arith.addf %68, %70 : vector<8x1xf32>
      %c0_51 = arith.constant 0 : index
      %c0_52 = arith.constant 0 : index
      %c0_53 = arith.constant 0 : index
      %72 = vector.load %arg5[%c0_51, %c0_52, %c0_53] : memref<1x1x1xf32, #tpu.memory_space<vmem>>, vector<1x1x1xf32>
      %73 = vector.shape_cast %71 : vector<8x1xf32> to vector<1x8x1xf32>
      %cst_54 = arith.constant dense<0.000000e+00> : vector<1xf32>
      %74 = vector.multi_reduction <add>, %73, %cst_54 [1, 2] : vector<1x8x1xf32> to vector<1xf32>
      %75 = vector.shape_cast %74 : vector<1xf32> to vector<1x1x1xf32>
      %76 = vector.extract %75[0, 0, 0] : f32 from vector<1x1x1xf32>
      %77 = vector.broadcast %76 : f32 to vector<1x1x1xf32>
      %78 = arith.addf %72, %77 : vector<1x1x1xf32>
      %c0_55 = arith.constant 0 : index
      %c0_56 = arith.constant 0 : index
      %c0_57 = arith.constant 0 : index
      %79 = vector.load %arg5[%c0_55, %c0_56, %c0_57] : memref<1x1x1xf32, #tpu.memory_space<vmem>>, vector<1x1x1xf32>
      tpu.vector_store %arg5[%c0_55, %c0_56, %c0_57], %78 {strides = array<i32>} : memref<1x1x1xf32, #tpu.memory_space<vmem>>, vector<1x1x1xf32>,
    } else {
    }
    return
  }
  func.func @transform_0(%arg0: i32, %arg1: i32, %arg2: i32) -> (i32, i32) {
    %c1_i32 = arith.constant 1 : i32
    %0 = arith.muli %arg0, %c1_i32 : i32
    %1 = arith.addi %0, %arg1 : i32
    %c0_i32 = arith.constant 0 : i32
    return %1, %arg2 : i32, i32
  }
  func.func @transform_1(%arg0: i32, %arg1: i32, %arg2: i32) -> (i32, i32) {
    %c1_i32 = arith.constant 1 : i32
    %0 = arith.muli %arg0, %c1_i32 : i32
    %1 = arith.addi %0, %arg1 : i32
    %c0_i32 = arith.constant 0 : i32
    return %1, %arg2 : i32, i32
  }
  func.func @transform_2(%arg0: i32, %arg1: i32, %arg2: i32) -> (i32, i32, i32) {
    %c0_i32 = arith.constant 0 : i32
    %c0_i32_0 = arith.constant 0 : i32
    %c0_i32_1 = arith.constant 0 : i32
    return %arg0, %c0_i32, %c0_i32_0 : i32, i32, i32
  }
}

</mosaic_0001>

<bundles_post_ra>
// kernel: tpu_custom_call.1
= control target key start
LH: loop header
LB: loop body
LE: loop exit
PB: predicated region body
PF: predicated region fallthrough
CT: control target
= control target key end

     0   :  { %7 = vsyncpa [#allocation8], 0  ;;  %s315_s0 = inlined_call_operand.hbm [shape: f32[8,32], index: 0, kind: input, shape index: {}]   ;;  %s316_s1 = inlined_call_operand.hbm [shape: f32[8,32], index: 1, kind: input, shape index: {}]   ;;  %s317_s2 = inlined_call_operand.hbm [shape: f32[1,1,1], index: 2, kind: output, shape index: {}]  }
   0x1   :  { %8 = vsyncpa [#allocation11], 0 }
   0x2   :  { %9 = vsyncpa [#allocation9], 0  ;;  %s263_s9 = smov [#allocation7]   ;;  %s264_s11 = smov [#allocation10]  }
   0x3   :  { %s19_s10 = sshll.u32 %s263_s9, 4  ;;  %s32_s12 = sshll.u32 %s264_s11, 4  ;;  %s20_s10 = int_to_ptr.vmem [resolvable:$true] %s19_s10  ;;  %s33_s12 = int_to_ptr.vmem [resolvable:$true] %s32_s12 }
   0x4   :  { %s205_s13 = scalar_lea.vmem %s20_s10, 128  ;;  %p210_p1 = scmp.lt.s32.totalorder %s20_s10, %s20_s10 }
   0x5   :  { %p206_p0 = scmp.ne.s32.totalorder %s20_s10, %s205_s13  ;;  %p211_p2 = scmp.lt.s32.totalorder %s205_s13, %s205_s13 }
   0x7   :  { %p212_p3 = por %p211_p2, %p210_p1 }
   0x9   :  { %p213_p4 = pnand %p212_p3, %p206_p0 }
   0xb   :  { %216 = shalt.err (!%p213_p4)
}
   0xc   :  { %22 = dma.hbm_to_vmem [thread:$0]  %s315_s0, 128, %s20_s10, [#allocation8]  }
   0xd   :  { %s225_s16 = scalar_lea.vmem %s33_s12, 128  ;;  %p230_p6 = scmp.lt.s32.totalorder %s33_s12, %s33_s12 }
   0xe   :  { %p226_p5 = scmp.ne.s32.totalorder %s33_s12, %s225_s16  ;;  %p231_p7 = scmp.lt.s32.totalorder %s225_s16, %s225_s16 }
  0x10   :  { %p232_p8 = por %p231_p7, %p230_p6 }
  0x12   :  { %p233_p9 = pnand %p232_p8, %p226_p5 }
  0x14   :  { %236 = shalt.err (!%p233_p9)
}
  0x15   :  { %35 = dma.hbm_to_vmem [thread:$0]  %s316_s1, 128, %s33_s12, [#allocation11]  }
  0x16   :  { %257 = dma.done.wait [#allocation8], 128  }
  0x17   :  { %258 = vsyncadd [#allocation8], 4294967168 }
  0x18   :  { %259 = dma.done.wait [#allocation11], 128  }
  0x19   :  { %260 = vsyncadd [#allocation11], 4294967168  ;;  %vm55_vm0 = vcmask 7168   ;;  %v265_v0 = vmov -inf   ;;  %v61_v1 = vld [vmem:[#allocation7] sm:$0xff]  ;;  %vm66_vm1 = vcmask 261120  }
  0x1a   :  { %56 = vst.msk [vmem:[#allocation2] sm:$0xff] %vm55_vm0, %v265_v0  ;;  %57 = vst.msk [vmem:[#allocation4] sm:$0xff] %vm55_vm0, %v265_v0  ;;  %v63_v2 = vld [vmem:[#allocation10] sm:$0xff]  ;;  %v62_v3 = vmul.f32 0.25, %v61_v1  ;;  %v266_v7 = vmov 0   ;;  %v267_v8 = vmov 0.0  }
  0x1b   :  { %v64_v4 = vmul.f32 0.25, %v63_v2  ;;  %181 = vset.pattern.permute.xlu1 %v266_v7  ;;  %182 = vset.pattern.permute.xlu0 %v266_v7  ;;  %58 = vst.msk [vmem:[#allocation3] sm:$0xff] %vm55_vm0, %v267_v8  ;;  %59 = vst.msk [vmem:[#allocation5] sm:$0xff] %vm55_vm0, %v267_v8  ;;  %vm50_vm2 = vcmask 0   ;;  %s268_s0 = smov [#allocation12]  }
  0x1c   :  { %v67_v5 = vsel %vm66_vm1, %v62_v3, -inf  ;;  %60 = vst.msk [vmem:[#allocation6] sm:$0xff] %vm55_vm0, %v267_v8  ;;  %s163_s1 = sshll.u32 %s268_s0, 4  ;;  %s164_s1 = int_to_ptr.vmem [resolvable:$true] %s163_s1 }
  0x1d   :  { %68 = vmax.xlane.f32.xlu0 %v67_v5  ;;  %v72_v6 = vsel %vm66_vm1, %v64_v4, -inf  ;;  %v98_v23 = vsub.f32 %v62_v3, %v64_v4  ;;  %51 = vst.msk [vmem:[#allocation12] sm:$0x1] %vm50_vm2, %v267_v8  ;;  %s237_s20 = scalar_lea.vmem %s164_s1, 16  ;;  %s241_s21 = scalar_lea.vmem %s164_s1, 32 }
  0x1e   :  { %p238_p10 = scmp.ne.s32.totalorder %s164_s1, %s237_s20  ;;  %p242_p11 = scmp.lt.s32.totalorder %s164_s1, %s164_s1 }
  0x1f   :  { %p243_p12 = scmp.lt.s32.totalorder %s241_s21, %s237_s20 }
  0x21   :  { %73 = vmax.xlane.f32.xlu0 %v72_v6  ;;  %v65_v9 = vld [vmem:[#allocation2] sm:$0xff]  ;;  %v71_v12 = vld [vmem:[#allocation4] sm:$0xff]  ;;  %p244_p13 = por %p243_p12, %p242_p11 }
  0x22   :  { %v100_v33 = vld [vmem:[#allocation3] sm:$0xff]  ;;  %v108_v38 = vld [vmem:[#allocation5] sm:$0xff] }
  0x23   :  { %v115_v37 = vld [vmem:[#allocation6] sm:$0xff]  ;;  %p245_p0 = pnand %p244_p13, %p238_p10 }
  0x24   :  { %v142_v5 = vld [vmem:[#allocation12] sm:$0x1] }
  0xa6   :  { %v69_v10 = vpop.xlane.xlu0 %68 }
  0xa7   :  { %v70_v11 = vmax.f32 %v65_v9, %v69_v10 }
  0xa9   :  { %v76_v13 = vsub.f32 %v65_v9, %v70_v11  ;;  %122 = vst.msk [vmem:[#allocation2] sm:$0xff] %vm55_vm0, %v70_v11  ;;  %84 = vperm.xlu1 %181, %v70_v11  }
  0xaa   :  { %v74_v14 = vpop.xlane.xlu0 %73 }
  0xab   :  { %v75_v15 = vmax.f32 %v71_v12, %v74_v14  ;;  %v77_v30 = vmul.f32 1.442695, %v76_v13 }
  0xad   :  { %v79_v16 = vsub.f32 %v71_v12, %v75_v15  ;;  %123 = vst.msk [vmem:[#allocation4] sm:$0xff] %vm55_vm0, %v75_v15  ;;  %92 = vperm.xlu1 %181, %v75_v15  }
  0xaf   :  { %v80_v31 = vmul.f32 1.442695, %v79_v16 }
  0xb0   :  { %v132_v51 = vld [vmem:[#allocation2] sm:$0xff] }
  0xb4   :  { %v131_v48 = vld [vmem:[#allocation4] sm:$0xff] }
  0xb5   :  { %v133_v54 = vsub.f32 %v131_v48, %v132_v51 }
 0x124   :  { %v85_v17 = vpop.permute.xlu1 %84 }
 0x125   :  { %v87_v18 = vsub.f32 %v62_v3, %v85_v17 }
 0x127   :  { %v88_v19 = vmul.f32 1.442695, %v87_v18 }
 0x128   :  { %v93_v20 = vpop.permute.xlu1 %92 }
 0x129   :  { %183 = vpow2.f32 %v88_v19  ;;  %v95_v21 = vsub.f32 %v64_v4, %v93_v20 }
 0x12b   :  { %v96_v22 = vmul.f32 1.442695, %v95_v21 }
 0x12d   :  { %185 = vpow2.f32 %v96_v22 }
 0x12e   :  { %187 = vpow2.f32 %v77_v30 }
 0x12f   :  { %189 = vpow2.f32 %v80_v31 }
 0x136   :  { %v184_v24 = vpop.eup %183 }
 0x137   :  { %v102_v25 = vsel %vm66_vm1, %v184_v24, 0.0  ;;  %v99_v26 = vmul.f32 %v184_v24, %v98_v23 }
 0x138   :  { %103 = vadd.xlane.f32.xlu0 %v102_v25 }
 0x139   :  { %v117_v28 = vsel %vm66_vm1, %v99_v26, 0.0 }
 0x13a   :  { %v186_v27 = vpop.eup %185 }
 0x13b   :  { %v110_v29 = vsel %vm66_vm1, %v186_v27, 0.0  ;;  %v188_v32 = vpop.eup %187 }
 0x13c   :  { %118 = vadd.xlane.f32.xlu0 %v117_v28  ;;  %111 = vadd.xlane.f32.xlu1 %v110_v29  ;;  %v101_v34 = vmul.f32 %v188_v32, %v100_v33  ;;  %v190_v35 = vpop.eup %189  ;;  %v116_v40 = vmul.f32 %v188_v32, %v115_v37 }
 0x13d   :  { %v109_v41 = vmul.f32 %v190_v35, %v108_v38 }
 0x1c1   :  { %v104_v36 = vpop.xlane.xlu0 %103 }
 0x1c2   :  { %v105_v39 = vadd.f32 %v104_v36, %v101_v34 }
 0x1c4   :  { %107 = vst.msk [vmem:[#allocation3] sm:$0xff] %vm55_vm0, %v105_v39 }
 0x1c5   :  { %v119_v42 = vpop.xlane.xlu0 %118  ;;  %v112_v43 = vpop.xlane.xlu1 %111 }
 0x1c6   :  { %v120_v44 = vadd.f32 %v119_v42, %v116_v40  ;;  %v113_v45 = vadd.f32 %v112_v43, %v109_v41 }
 0x1c8   :  { %121 = vst.msk [vmem:[#allocation6] sm:$0xff] %vm55_vm0, %v120_v44  ;;  %114 = vst.msk [vmem:[#allocation5] sm:$0xff] %vm55_vm0, %v113_v45 }
 0x1cb   :  { %v128_v46 = vld [vmem:[#allocation3] sm:$0xff] }
 0x1cc   :  { %191 = vrcp.f32 %v128_v46 }
 0x1cd   :  { %193 = vlog2.f32 %v128_v46 }
 0x1cf   :  { %v138_v47 = vld [vmem:[#allocation5] sm:$0xff]  ;;  %v127_v50 = vld [vmem:[#allocation6] sm:$0xff] }
 0x1d0   :  { %195 = vlog2.f32 %v138_v47 }
 0x1d9   :  { %v192_v49 = vpop.eup %191 }
 0x1da   :  { %v194_v52 = vpop.eup %193  ;;  %v130_v53 = vmul.f32 %v192_v49, %v127_v50 }
 0x1db   :  { %v136_v56 = vmul.f32 0.6931472, %v194_v52 }
 0x1dc   :  { %v134_v55 = vadd.f32 %v133_v54, %v130_v53 }
 0x1dd   :  { %v196_v57 = vpop.eup %195 }
 0x1de   :  { %v137_v58 = vsub.f32 %v134_v55, %v136_v56  ;;  %v140_v59 = vmul.f32 0.6931472, %v196_v57 }
 0x1e0   :  { %v141_v60 = vadd.f32 %v140_v59, %v137_v58 }
 0x1e2   :  { %v143_v61 = vsel %vm55_vm0, %v141_v60, 0.0 }
 0x1e3   :  { %144 = vadd.xlane.f32.xlu0 %v143_v61 }
 0x26c   :  { %v145_v62 = vpop.xlane.xlu0 %144 }
 0x26d   :  { %v146_v63 = vrot.slane %v145_v62, 4 }
 0x26f   :  { %v147_v0 = vadd.f32 %v146_v63, %v145_v62 }
 0x271   :  { %v148_v1 = vrot.slane %v147_v0, 2 }
 0x273   :  { %v149_v2 = vadd.f32 %v148_v1, %v147_v0 }
 0x275   :  { %v150_v3 = vrot.slane %v149_v2, 1 }
 0x277   :  { %v151_v4 = vadd.f32 %v150_v3, %v149_v2 }
 0x279   :  { %173 = vpush %v151_v4 }
 0x2aa   :  { %s174_s19 = spop %173 }
 0x2ab   :  { %v153_v6 = vstv %s174_s19 }
 0x2ac   :  { %v154_v7 = vadd.f32 %v153_v6, %v142_v5 }
 0x2ae   :  { %156 = vst.msk [vmem:[#allocation12] sm:$0x1] %vm50_vm2, %v154_v7 }
 0x2af   :  { %248 = shalt.err (!%p245_p0)
}
 0x2b0   :  { %166 = dma.vmem_to_hbm [thread:$0]  %s164_s1, 16, %s317_s2, [#allocation9]  }
 0x2b1   :  { %261 = dma.done.wait [#allocation9], 16  }
 0x2b2   :  { %262 = vsyncadd [#allocation9], 4294967280 }
 0x2b3   :  { %170 = vsyncpa [#allocation8], 1 }
 0x2b4   :  { %171 = vsyncpa [#allocation11], 1 }
 0x2b5   :  { %172 = vsyncpa [#allocation9], 1 }

</bundles_post_ra>
